<compile_context>
chip_gen: v7x
topology: tpu7x:2x2x1
jax: 0.10.0
libtpu: 0.0.40
codegen_flags: <defaults>
</compile_context>

<pallas_src>
import functools

import jax
import jax.numpy as jnp
from jax.experimental import pallas as pl
from jax.experimental.pallas import tpu as pltpu


def _ce_ls_kernel(logits_ref, targets_ref, loss_ref, *, epsilon, num_classes,
                  inv_T):
    # logits_ref : (tile_n, C)   input dtype (f32 / bf16)
    # targets_ref: (1, 1, tile_n) int32  (lane-dense)
    # loss_ref   : (1, 1, tile_n) f32    (lane-dense)
    x = logits_ref[...].astype(jnp.float32)
    if inv_T != 1.0:  # elide the temperature multiply in the common T == 1 case
        x = x * inv_T
    tile_n = x.shape[0]

    # Lane-dense targets (1, tile_n) -> column (tile_n, 1): one cheap relayout.
    tgt_col = jnp.transpose(targets_ref[0])  # (tile_n, 1) int32

    # Numerically stable logsumexp along the class (lane) axis.
    m = jnp.max(x, axis=1, keepdims=True)                               # (T,1)
    lse = jnp.log(jnp.sum(jnp.exp(x - m), axis=1, keepdims=True)) + m   # (T,1)

    # Fused smoothed weighted reduction:
    #   w[i,j] = 1 - eps + eps/C   if j == t_i
    #          = eps/C             otherwise
    #   loss_i = lse_i - sum_j w[i,j] * x[i,j]
    # (Out-of-range t_i => mask never hits => pure eps/C smoothing term.)
    class_ids = jax.lax.broadcasted_iota(jnp.int32, x.shape, 1)
    w_hi = 1.0 - epsilon + epsilon / num_classes
    w_lo = epsilon / num_classes
    wsum = jnp.sum(jnp.where(class_ids == tgt_col, w_hi, w_lo) * x,
                   axis=1, keepdims=True)                               # (T,1)
    loss = lse - wsum                                                   # (T,1)

    # Store lane-dense: (tile_n, 1) -> (1, 1, tile_n).
    loss_ref[...] = jnp.transpose(loss).reshape(1, 1, tile_n)


def _choose_tile_n(n, c, target_f32_bytes=6 * 1024 * 1024):
    """Rows per block, sized by the f32 working tile (largest in-kernel temp).

    Per-step VMEM ~= 2x input tile (<= target in input dtype) + ~3x f32 tile
    of elementwise temporaries -> ~30 MiB worst case at the 6 MiB target,
    leaving headroom under the 48 MiB vmem_limit_bytes set below.
    """
    rows = max(8, (target_f32_bytes // max(1, c * 4)) // 8 * 8)
    n8 = ((n + 7) // 8) * 8
    rows = min(rows, n8)
    # Keep at least two grid steps for non-trivial inputs so both v7x
    # TensorCores (the "parallel" axis) get work.
    if rows >= n8 and n8 * c * 4 >= 2 * 1024 * 1024:
        rows = max(8, ((n8 // 2 + 7) // 8) * 8)
    return rows


def cross_entropy_label_smooth(logits, targets, *, num_classes, epsilon=0.1,
                               T=1.0, size_average=True, tile_n=None):
    """JAX/Pallas equivalent of CrossEntropyLabelSmooth.forward.

    logits:  (N, C) float array (f32 or bf16)
    targets: (N,)   int array of class indices
    Returns a scalar (size_average=True) or an (N,) f32 vector otherwise.
    """
    n, c = logits.shape
    assert c == num_classes

    if tile_n is None:
        tile_n = _choose_tile_n(n, c)
    tile_n = max(8, (int(tile_n) + 7) // 8 * 8)

    num_tiles = pl.cdiv(n, tile_n)
    n_pad = num_tiles * tile_n

    # Targets are tiny: pad (cheap) and reshape to the lane-dense
    # (num_tiles, 1, tile_n) layout.  The logits are NOT padded/copied: the
    # ragged last block may read garbage rows; their per-row losses are sliced
    # off below before any reduction, so they never contribute.
    tgt = targets.astype(jnp.int32)
    if n_pad != n:
        tgt = jnp.pad(tgt, (0, n_pad - n))
    tgt = tgt.reshape(num_tiles, 1, tile_n)

    kernel = functools.partial(
        _ce_ls_kernel,
        epsilon=float(epsilon),
        num_classes=int(num_classes),
        inv_T=float(1.0 / T),
    )

    per_row = pl.pallas_call(
        kernel,
        out_shape=jax.ShapeDtypeStruct((num_tiles, 1, tile_n), jnp.float32),
        grid=(num_tiles,),
        in_specs=[
            pl.BlockSpec((tile_n, c), lambda i: (i, 0)),        # logits tile
            pl.BlockSpec((1, 1, tile_n), lambda i: (i, 0, 0)),  # lane-dense tgt
        ],
        out_specs=pl.BlockSpec((1, 1, tile_n), lambda i: (i, 0, 0)),
        compiler_params=pltpu.CompilerParams(
            dimension_semantics=("parallel",),
            vmem_limit_bytes=48 * 1024 * 1024),
    )(logits, tgt)

    per_row = per_row.reshape(n_pad)[:n]
    if size_average:
        # (-targets * log_probs).mean(0).sum() == sum(per_row) / true N
        return jnp.sum(per_row) / n
    return per_row


def _reference(logits, targets, *, num_classes, epsilon=0.1, T=1.0,
               size_average=True):
    x = logits.astype(jnp.float32) / T
    log_probs = jax.nn.log_softmax(x, axis=1)
    one_hot = jax.nn.one_hot(targets, num_classes, dtype=jnp.float32)
    smooth = (1.0 - epsilon) * one_hot + epsilon / num_classes
    neg = -smooth * log_probs
    if size_average:
        return neg.mean(0).sum()
    return neg.sum(1)


if __name__ == "__main__":
    num_classes = 128   # lane-friendly class count (kernel sweet spot is C >= 128)
    epsilon = 0.1

    key = jax.random.PRNGKey(0)
    k1, k2, k3, k4, k5, k6 = jax.random.split(key, 6)

    # --- case 1: f32, single tile, T=1, size_average=True ---
    batch = 8
    logits = jax.random.normal(k1, (batch, num_classes), dtype=jnp.float32)
    targets = jax.random.randint(k2, (batch,), 0, num_classes, dtype=jnp.int32)
    loss = cross_entropy_label_smooth(
        logits, targets, num_classes=num_classes, epsilon=epsilon, T=1.0,
        size_average=True)
    loss = jax.block_until_ready(loss)
    ref = _reference(logits, targets, num_classes=num_classes, epsilon=epsilon,
                     T=1.0, size_average=True)
    assert jnp.allclose(loss, ref, rtol=1e-5, atol=1e-5), (loss, ref)

    # --- case 2: f32, ragged batch (no logits padding), T=2, per-row losses ---
    batch2 = 13
    logits2 = jax.random.normal(k3, (batch2, num_classes), dtype=jnp.float32)
    targets2 = jax.random.randint(k4, (batch2,), 0, num_classes,
                                  dtype=jnp.int32)
    loss_vec = cross_entropy_label_smooth(
        logits2, targets2, num_classes=num_classes, epsilon=epsilon, T=2.0,
        size_average=False)
    loss_vec = jax.block_until_ready(loss_vec)
    ref_vec = _reference(logits2, targets2, num_classes=num_classes,
                         epsilon=epsilon, T=2.0, size_average=False)
    assert loss_vec.shape == (batch2,)
    assert jnp.allclose(loss_vec, ref_vec, rtol=1e-5, atol=1e-5)

    # --- case 3: bf16 ingest (halved HBM traffic), f32 math in-kernel ---
    logits_bf16 = logits.astype(jnp.bfloat16)
    loss_bf16 = cross_entropy_label_smooth(
        logits_bf16, targets, num_classes=num_classes, epsilon=epsilon, T=1.0,
        size_average=True)
    loss_bf16 = jax.block_until_ready(loss_bf16)
    ref_bf16 = _reference(logits_bf16, targets, num_classes=num_classes,
                          epsilon=epsilon, T=1.0, size_average=True)
    assert jnp.allclose(loss_bf16, ref_bf16, rtol=2e-2, atol=2e-2)

    # --- case 4: multi-tile grid with a ragged last block (explicit tile_n) ---
    batch4 = 40
    logits4 = jax.random.normal(k5, (batch4, num_classes), dtype=jnp.float32)
    targets4 = jax.random.randint(k6, (batch4,), 0, num_classes,
                                  dtype=jnp.int32)
    loss4 = cross_entropy_label_smooth(
        logits4, targets4, num_classes=num_classes, epsilon=epsilon, T=1.0,
        size_average=True, tile_n=16)
    loss4 = jax.block_until_ready(loss4)
    ref4 = _reference(logits4, targets4, num_classes=num_classes,
                      epsilon=epsilon, T=1.0, size_average=True)
    assert jnp.allclose(loss4, ref4, rtol=1e-5, atol=1e-5), (loss4, ref4)

    print("KERNEL_OK")
</pallas_src>

<mosaic_0001>
module attributes {stable_mosaic.version = 11 : i64} {
  func.func @_ce_ls_kernel(%arg0: i32, %arg1: memref<8x128xf32, #tpu.memory_space<vmem>>, %arg2: memref<1x1x8xi32, #tpu.memory_space<vmem>>, %arg3: memref<1x1x8xf32, #tpu.memory_space<vmem>>) attributes {dimension_semantics = [#tpu.dimension_semantics<parallel>], iteration_bounds = array<i64: 1>, scalar_prefetch = 0 : i64, scratch_operands = 0 : i64, tpu.core_type = #tpu.core_type<tc>, window_params = [{transform_indices = @transform_0, window_bounds = array<i64: 8, 128>}, {transform_indices = @transform_1, window_bounds = array<i64: 1, 1, 8>}, {transform_indices = @transform_2, window_bounds = array<i64: 1, 1, 8>}]} {
    %c0 = arith.constant 0 : index
    %c0_0 = arith.constant 0 : index
    %0 = vector.load %arg1[%c0, %c0_0] : memref<8x128xf32, #tpu.memory_space<vmem>>, vector<8x128xf32>
    %c0_1 = arith.constant 0 : index
    %c0_2 = arith.constant 0 : index
    %c0_3 = arith.constant 0 : index
    %1 = vector.load %arg2[%c0_1, %c0_2, %c0_3] : memref<1x1x8xi32, #tpu.memory_space<vmem>>, vector<1x1x8xi32>
    %2 = vector.shape_cast %1 : vector<1x1x8xi32> to vector<1x8xi32>
    %3 = tpu.transpose %2, [1, 0] : vector<1x8xi32> -> vector<8x1xi32>
    %cst = arith.constant dense<0xFF800000> : vector<8xf32>
    %4 = vector.multi_reduction <maximumf>, %0, %cst [1] : vector<8x128xf32> to vector<8xf32>
    %5 = vector.shape_cast %4 : vector<8xf32> to vector<8x1xf32>
    %6 = vector.broadcast %5 : vector<8x1xf32> to vector<8x128xf32>
    %7 = arith.subf %0, %6 : vector<8x128xf32>
    %8 = math.exp %7 : vector<8x128xf32>
    %cst_4 = arith.constant dense<0.000000e+00> : vector<8xf32>
    %9 = vector.multi_reduction <add>, %8, %cst_4 [1] : vector<8x128xf32> to vector<8xf32>
    %10 = vector.shape_cast %9 : vector<8xf32> to vector<8x1xf32>
    %11 = math.log %10 : vector<8x1xf32>
    %12 = arith.addf %11, %5 : vector<8x1xf32>
    %13 = tpu.iota {dimensions = array<i32: 1>} : vector<8x128xi32>
    %14 = vector.broadcast %3 : vector<8x1xi32> to vector<8x128xi32>
    %15 = arith.cmpi eq, %13, %14 : vector<8x128xi32>
    %cst_5 = arith.constant 0.900781273 : f32
    %cst_6 = arith.constant 7.812500e-04 : f32
    %16 = vector.broadcast %cst_5 : f32 to vector<8x128xf32>
    %17 = vector.broadcast %cst_6 : f32 to vector<8x128xf32>
    %18 = arith.select %15, %16, %17 : vector<8x128xi1>, vector<8x128xf32>
    %19 = arith.mulf %18, %0 : vector<8x128xf32>
    %cst_7 = arith.constant dense<0.000000e+00> : vector<8xf32>
    %20 = vector.multi_reduction <add>, %19, %cst_7 [1] : vector<8x128xf32> to vector<8xf32>
    %21 = vector.shape_cast %20 : vector<8xf32> to vector<8x1xf32>
    %22 = arith.subf %12, %21 : vector<8x1xf32>
    %23 = tpu.transpose %22, [1, 0] : vector<8x1xf32> -> vector<1x8xf32>
    %24 = vector.shape_cast %23 : vector<1x8xf32> to vector<1x1x8xf32>
    %c0_8 = arith.constant 0 : index
    %c0_9 = arith.constant 0 : index
    %c0_10 = arith.constant 0 : index
    %25 = vector.load %arg3[%c0_8, %c0_9, %c0_10] : memref<1x1x8xf32, #tpu.memory_space<vmem>>, vector<1x1x8xf32>
    tpu.vector_store %arg3[%c0_8, %c0_9, %c0_10], %24 {strides = array<i32>} : memref<1x1x8xf32, #tpu.memory_space<vmem>>, vector<1x1x8xf32>,
    return
  }
  func.func @transform_0(%arg0: i32) -> (i32, i32) {
    %c0_i32 = arith.constant 0 : i32
    %c0_i32_0 = arith.constant 0 : i32
    return %arg0, %c0_i32 : i32, i32
  }
  func.func @transform_1(%arg0: i32) -> (i32, i32, i32) {
    %c0_i32 = arith.constant 0 : i32
    %c0_i32_0 = arith.constant 0 : i32
    %c0_i32_1 = arith.constant 0 : i32
    return %arg0, %c0_i32, %c0_i32_0 : i32, i32, i32
  }
  func.func @transform_2(%arg0: i32) -> (i32, i32, i32) {
    %c0_i32 = arith.constant 0 : i32
    %c0_i32_0 = arith.constant 0 : i32
    %c0_i32_1 = arith.constant 0 : i32
    return %arg0, %c0_i32, %c0_i32_0 : i32, i32, i32
  }
}

</mosaic_0001>

<bundles_post_ra>
// kernel: tpu_custom_call.1
= control target key start
LH: loop header
LB: loop body
LE: loop exit
PB: predicated region body
PF: predicated region fallthrough
CT: control target
= control target key end

     0   :  { %7 = vsyncpa [#allocation3], 0  ;;  %s233_s0 = inlined_call_operand.hbm [shape: f32[8,128], index: 0, kind: input, shape index: {}]   ;;  %s234_s1 = inlined_call_operand.vmem [shape: s32[1,1,8], index: 1, kind: input, shape index: {}]   ;;  %s235_s2 = inlined_call_operand.hbm [shape: f32[1,1,8], index: 2, kind: output, shape index: {}]  }
   0x1   :  { %8 = vsyncpa [#allocation4], 0  ;;  %s187_s9 = smov [#allocation2]   ;;  %s139_s13 = scalar_lea.hbm %s233_s0, 128 }
   0x2   :  { %s15_s10 = sshll.u32 %s187_s9, 4  ;;  %p140_p0 = scmp.ne.s32.totalorder %s233_s0, %s139_s13  ;;  %s16_s10 = int_to_ptr.vmem [resolvable:$true] %s15_s10 }
   0x3   :  { %p143_p1 = scmp.lt.u32.totalorder %s139_s13, %s233_s0 }
   0x5   :  { %p145_p2 = pnand %p143_p1, %p140_p0 }
   0x7   :  { %148 = shalt.err (!%p145_p2)
}
   0x8   :  { %s149_s18 = scalar_lea.vmem %s16_s10, 128  ;;  %p154_p4 = scmp.lt.s32.totalorder %s16_s10, %s16_s10 }
   0x9   :  { %p150_p3 = scmp.ne.s32.totalorder %s16_s10, %s149_s18  ;;  %p155_p5 = scmp.lt.s32.totalorder %s149_s18, %s149_s18 }
   0xb   :  { %p156_p6 = por %p155_p5, %p154_p4 }
   0xd   :  { %p157_p7 = pnand %p156_p6, %p150_p3 }
   0xf   :  { %160 = shalt.err (!%p157_p7)
}
  0x10   :  { %18 = dma.hbm_to_vmem [thread:$0]  %s233_s0, 128, %s16_s10, [#allocation3]  }
  0x11   :  { %183 = dma.done.wait [#allocation3], 128  }
  0x12   :  { %184 = vsyncadd [#allocation3], 4294967168  ;;  %v188_v0 = vmov 0   ;;  %v25_v1 = vld [vmem:[%s234_s1] sm:$0x1]  ;;  %v68_v8 = vlaneseq  ;;  %s190_s0 = smov [#allocation5]  }
  0x13   :  { %133 = vset.pattern.permute.xlu1 %v188_v0  ;;  %26 = vxpose.xlu0.b32.start.end [1/1] (short) (narrow) %v25_v1, 8  ;;  %v24_v2 = vld [vmem:[#allocation2] sm:$0xff]  ;;  %v189_v11 = vmov 0.00078125   ;;  %s119_s1 = sshll.u32 %s190_s0, 4  ;;  %vm111_vm1 = vcmask 57344   ;;  %s120_s1 = int_to_ptr.vmem [resolvable:$true] %s119_s1 }
  0x14   :  { %v69_v9 = vand.u32 127, %v68_v8  ;;  %s161_s23 = scalar_lea.vmem %s120_s1, 16  ;;  %s165_s24 = scalar_lea.vmem %s120_s1, 32 }
  0x15   :  { %p162_p8 = scmp.ne.s32.totalorder %s120_s1, %s161_s23  ;;  %p166_p9 = scmp.lt.s32.totalorder %s120_s1, %s120_s1 }
  0x16   :  { %p167_p10 = scmp.lt.s32.totalorder %s165_s24, %s161_s23 }
  0x18   :  { %p168_p11 = por %p167_p10, %p166_p9 }
  0x1a   :  { %p169_p12 = pnand %p168_p11, %p162_p8 }
  0x3c   :  { %134 = vset.pattern.permute.xlu0 %v188_v0 }
  0x40   :  { %58 = vmax.xlane.f32.xlu0 %v24_v2 }
  0x93   :  { %v42_v3 = vpop.trf.xlu0 }
  0x94   :  { %71 = vperm.xlu1 %133, %v42_v3  }
  0xcd   :  { %v59_v4 = vpop.xlane.xlu0 %58 }
  0xce   :  { %v60_v5 = vsub.f32 %v24_v2, %v59_v4 }
  0xd0   :  { %v61_v6 = vmul.f32 1.442695, %v60_v5 }
  0xd2   :  { %135 = vpow2.f32 %v61_v6 }
  0xdc   :  { %v136_v7 = vpop.eup %135 }
  0xdd   :  { %63 = vadd.xlane.f32.xlu1 %v136_v7 }
 0x113   :  { %v72_v10 = vpop.permute.xlu1 %71 }
 0x114   :  { %vm73_vm0 = vcmp.eq.s32.totalorder %v69_v9, %v72_v10 }
 0x115   :  { %v74_v12 = vsel %vm73_vm0, 0.9007813, %v189_v11 }
 0x116   :  { %v75_v13 = vmul.f32 %v74_v12, %v24_v2 }
 0x118   :  { %76 = vadd.xlane.f32.xlu1 %v75_v13 }
 0x16a   :  { %v64_v14 = vpop.xlane.xlu1 %63 }
 0x16b   :  { %137 = vlog2.f32 %v64_v14 }
 0x175   :  { %v138_v15 = vpop.eup %137 }
 0x176   :  { %v66_v16 = vmul.f32 0.6931472, %v138_v15 }
 0x178   :  { %v67_v17 = vadd.f32 %v66_v16, %v59_v4 }
 0x1a5   :  { %v77_v18 = vpop.xlane.xlu1 %76 }
 0x1a6   :  { %v78_v19 = vsub.f32 %v67_v17, %v77_v18 }
 0x1a8   :  { %79 = vxpose.xlu1.b32.start.end [1/1] (short) (narrow) %v78_v19, 8 }
 0x228   :  { %v95_v20 = vpop.trf.xlu1 }
 0x229   :  { %112 = vst.msk [vmem:[#allocation5] sm:$0x1] %vm111_vm1, %v95_v20 }
 0x22a   :  { %172 = shalt.err (!%p169_p12)
}
 0x22b   :  { %s173_s27 = scalar_lea.hbm %s235_s2, 16 }
 0x22c   :  { %p174_p13 = scmp.ne.s32.totalorder %s235_s2, %s173_s27  ;;  %p177_p0 = scmp.lt.u32.totalorder %s173_s27, %s235_s2 }
 0x22e   :  { %p179_p1 = pnand %p177_p0, %p174_p13 }
 0x230   :  { %182 = shalt.err (!%p179_p1)
}
 0x231   :  { %122 = dma.vmem_to_hbm [thread:$0]  %s120_s1, 16, %s235_s2, [#allocation4]  }
 0x232   :  { %185 = dma.done.wait [#allocation4], 16  }
 0x233   :  { %186 = vsyncadd [#allocation4], 4294967280 }
 0x234   :  { %126 = vsyncpa [#allocation3], 1 }
 0x235   :  { %127 = vsyncpa [#allocation4], 1 }

</bundles_post_ra>
